<compile_context>
chip_gen: v6e
topology: v6e:2x2x1
jax: 0.10.0
libtpu: 0.0.40
codegen_flags: <defaults>
</compile_context>

<pallas_src>
import jax
import jax.numpy as jnp
from jax import lax
from jax.experimental import pallas as pl
from jax.experimental.pallas import tpu as pltpu


def _attention_kernel(x_ref, wq_ref, bq_ref, wk_ref, bk_ref, wv_ref, bv_ref,
                      o_ref):
    B, S, E = x_ref.shape
    inv_scale = 1.0 / (float(E) ** 0.5)          # trace-time constant

    # ---- Q / K / V projections: three small MXU matmuls --------------------
    # (B*S, E) x (E, E); MXU slack is huge here, and separate outputs avoid
    # any non-128-aligned lane slicing of a packed QKV result.
    x2 = x_ref[...].reshape(B * S, E)            # leading-dim merge (free)
    q = (jnp.dot(x2, wq_ref[...], preferred_element_type=jnp.float32)
         + bq_ref[...]).reshape(B, S, E)
    k = (jnp.dot(x2, wk_ref[...], preferred_element_type=jnp.float32)
         + bk_ref[...]).reshape(B, S, E)
    v = (jnp.dot(x2, wv_ref[...], preferred_element_type=jnp.float32)
         + bv_ref[...]).reshape(B, S, E)

    # ---- attn_scores = Q @ K^T / sqrt(E)  (contract last axes, batch on B) -
    scores = lax.dot_general(
        q, k,
        dimension_numbers=(((2,), (2,)), ((0,), (0,))),
        preferred_element_type=jnp.float32)      # (B, S, S)
    scores = scores * inv_scale                  # VPU op, free under DMA slack

    # ---- numerically-stable softmax over the last axis ---------------------
    m = jnp.max(scores, axis=-1, keepdims=True)
    e = jnp.exp(scores - m)
    denom = jnp.sum(e, axis=-1, keepdims=True)
    attn = e * pl.reciprocal(denom, approx=False)

    # ---- out = attn_weights @ V --------------------------------------------
    out = lax.dot_general(
        attn, v,
        dimension_numbers=(((2,), (1,)), ((0,), (0,))),
        preferred_element_type=jnp.float32)      # (B, S, E)

    o_ref[...] = out.astype(o_ref.dtype)


def simple_attention(x, wq_t, bq, wk_t, bk, wv_t, bv):
    """x: (B, S, E) float32.

    w*_t: (E, E) weights stored pre-transposed (y = x @ W_t + b == torch's
    x @ W.T + b).  b*: (1, E).  All parameters are passed through untouched —
    no per-call wrapper-side packing or scaling.
    """
    B, S, E = x.shape

    flops = (3 * 2 * B * S * E * E          # projections
             + 2 * B * S * S * E            # Q @ K^T
             + 2 * B * S * S * E)           # attn @ V
    transcendentals = B * S * S + B * S     # exp + reciprocal
    bytes_accessed = 4 * (B * S * E         # x in
                          + 3 * E * E + 3 * E  # weights + biases
                          + B * S * E)      # out
    # (in-VMEM intermediates intentionally not counted; advisory only)

    weight_spec = pl.BlockSpec((E, E), lambda i: (0, 0))
    bias_spec = pl.BlockSpec((1, E), lambda i: (0, 0))

    return pl.pallas_call(
        _attention_kernel,
        out_shape=jax.ShapeDtypeStruct((B, S, E), x.dtype),
        grid_spec=pltpu.PrefetchScalarGridSpec(
            num_scalar_prefetch=0,
            grid=(1,),                                       # single invocation
            in_specs=[
                pl.BlockSpec((B, S, E), lambda i: (0, 0, 0)),  # x
                weight_spec, bias_spec,                        # Wq, bq
                weight_spec, bias_spec,                        # Wk, bk
                weight_spec, bias_spec,                        # Wv, bv
            ],
            out_specs=pl.BlockSpec((B, S, E), lambda i: (0, 0, 0)),
        ),
        compiler_params=pltpu.CompilerParams(
            dimension_semantics=("arbitrary",)),
        cost_estimate=pl.CostEstimate(
            flops=flops,
            transcendentals=transcendentals,
            bytes_accessed=bytes_accessed),
    )(x, wq_t, bq, wk_t, bk, wv_t, bv)


def _reference(x, wq_t, bq, wk_t, bk, wv_t, bv):
    """Pure-JAX reference mirroring the PyTorch forward."""
    E = x.shape[-1]
    q = x @ wq_t + bq
    k = x @ wk_t + bk
    v = x @ wv_t + bv
    scores = jnp.einsum("bqe,bke->bqk", q, k) / (E ** 0.5)
    w = jax.nn.softmax(scores, axis=-1)
    return jnp.einsum("bqk,bke->bqe", w, v)


if __name__ == "__main__":
    B, S, E = 2, 8, 32  # batch, seq, embed_dim

    key = jax.random.PRNGKey(0)
    kx, kq, kbq, kk, kbk, kv, kbv = jax.random.split(key, 7)

    x = jax.random.normal(kx, (B, S, E), dtype=jnp.float32)

    # Deterministic parameter init (uniform like torch Linear default scale).
    bound = 1.0 / (E ** 0.5)
    wq_t = jax.random.uniform(kq, (E, E), jnp.float32, -bound, bound)
    wk_t = jax.random.uniform(kk, (E, E), jnp.float32, -bound, bound)
    wv_t = jax.random.uniform(kv, (E, E), jnp.float32, -bound, bound)
    bq = jax.random.uniform(kbq, (1, E), jnp.float32, -bound, bound)
    bk = jax.random.uniform(kbk, (1, E), jnp.float32, -bound, bound)
    bv = jax.random.uniform(kbv, (1, E), jnp.float32, -bound, bound)

    out = simple_attention(x, wq_t, bq, wk_t, bk, wv_t, bv)
    out = jax.block_until_ready(out)

    ref = _reference(x, wq_t, bq, wk_t, bk, wv_t, bv)
    assert out.shape == (B, S, E)
    assert jnp.allclose(out, ref, atol=1e-5, rtol=1e-5), "mismatch vs reference"

    print("KERNEL_OK")
</pallas_src>

<mosaic_0001>
module attributes {stable_mosaic.version = 11 : i64} {
  func.func @_attention_kernel(%arg0: i32, %arg1: memref<2x8x32xf32, #tpu.memory_space<vmem>>, %arg2: memref<32x32xf32, #tpu.memory_space<vmem>>, %arg3: memref<1x32xf32, #tpu.memory_space<vmem>>, %arg4: memref<32x32xf32, #tpu.memory_space<vmem>>, %arg5: memref<1x32xf32, #tpu.memory_space<vmem>>, %arg6: memref<32x32xf32, #tpu.memory_space<vmem>>, %arg7: memref<1x32xf32, #tpu.memory_space<vmem>>, %arg8: memref<2x8x32xf32, #tpu.memory_space<vmem>>) attributes {dimension_semantics = [#tpu.dimension_semantics<arbitrary>], iteration_bounds = array<i64: 1>, scalar_prefetch = 0 : i64, scratch_operands = 0 : i64, tpu.core_type = #tpu.core_type<tc>, window_params = [{pipeline_mode = #tpu.pipeline_mode<synchronous>, transform_indices = @transform_0, window_bounds = array<i64: 2, 8, 32>}, {pipeline_mode = #tpu.pipeline_mode<synchronous>, transform_indices = @transform_1, window_bounds = array<i64: 32, 32>}, {pipeline_mode = #tpu.pipeline_mode<synchronous>, transform_indices = @transform_2, window_bounds = array<i64: 1, 32>}, {pipeline_mode = #tpu.pipeline_mode<synchronous>, transform_indices = @transform_3, window_bounds = array<i64: 32, 32>}, {pipeline_mode = #tpu.pipeline_mode<synchronous>, transform_indices = @transform_4, window_bounds = array<i64: 1, 32>}, {pipeline_mode = #tpu.pipeline_mode<synchronous>, transform_indices = @transform_5, window_bounds = array<i64: 32, 32>}, {pipeline_mode = #tpu.pipeline_mode<synchronous>, transform_indices = @transform_6, window_bounds = array<i64: 1, 32>}, {pipeline_mode = #tpu.pipeline_mode<synchronous>, transform_indices = @transform_7, window_bounds = array<i64: 2, 8, 32>}]} {
    %c0 = arith.constant 0 : index
    %c0_0 = arith.constant 0 : index
    %c0_1 = arith.constant 0 : index
    %0 = vector.load %arg1[%c0, %c0_0, %c0_1] : memref<2x8x32xf32, #tpu.memory_space<vmem>>, vector<2x8x32xf32>
    %1 = vector.shape_cast %0 : vector<2x8x32xf32> to vector<16x32xf32>
    %c0_2 = arith.constant 0 : index
    %c0_3 = arith.constant 0 : index
    %2 = vector.load %arg2[%c0_2, %c0_3] : memref<32x32xf32, #tpu.memory_space<vmem>>, vector<32x32xf32>
    %cst = arith.constant dense<0.000000e+00> : vector<16x32xf32>
    %3 = tpu.matmul %1, %2, %cst {dimension_numbers = #tpu.dot_dimension_numbers<[1], [0], [0], [1], [0, 0, 1, 1], [], []>} : vector<16x32xf32>, vector<32x32xf32>, vector<16x32xf32> -> vector<16x32xf32>
    %c0_4 = arith.constant 0 : index
    %c0_5 = arith.constant 0 : index
    %4 = vector.load %arg3[%c0_4, %c0_5] : memref<1x32xf32, #tpu.memory_space<vmem>>, vector<1x32xf32>
    %5 = vector.broadcast %4 : vector<1x32xf32> to vector<16x32xf32>
    %6 = arith.addf %3, %5 : vector<16x32xf32>
    %7 = vector.shape_cast %6 : vector<16x32xf32> to vector<2x8x32xf32>
    %c0_6 = arith.constant 0 : index
    %c0_7 = arith.constant 0 : index
    %8 = vector.load %arg4[%c0_6, %c0_7] : memref<32x32xf32, #tpu.memory_space<vmem>>, vector<32x32xf32>
    %cst_8 = arith.constant dense<0.000000e+00> : vector<16x32xf32>
    %9 = tpu.matmul %1, %8, %cst_8 {dimension_numbers = #tpu.dot_dimension_numbers<[1], [0], [0], [1], [0, 0, 1, 1], [], []>} : vector<16x32xf32>, vector<32x32xf32>, vector<16x32xf32> -> vector<16x32xf32>
    %c0_9 = arith.constant 0 : index
    %c0_10 = arith.constant 0 : index
    %10 = vector.load %arg5[%c0_9, %c0_10] : memref<1x32xf32, #tpu.memory_space<vmem>>, vector<1x32xf32>
    %11 = vector.broadcast %10 : vector<1x32xf32> to vector<16x32xf32>
    %12 = arith.addf %9, %11 : vector<16x32xf32>
    %13 = vector.shape_cast %12 : vector<16x32xf32> to vector<2x8x32xf32>
    %c0_11 = arith.constant 0 : index
    %c0_12 = arith.constant 0 : index
    %14 = vector.load %arg6[%c0_11, %c0_12] : memref<32x32xf32, #tpu.memory_space<vmem>>, vector<32x32xf32>
    %cst_13 = arith.constant dense<0.000000e+00> : vector<16x32xf32>
    %15 = tpu.matmul %1, %14, %cst_13 {dimension_numbers = #tpu.dot_dimension_numbers<[1], [0], [0], [1], [0, 0, 1, 1], [], []>} : vector<16x32xf32>, vector<32x32xf32>, vector<16x32xf32> -> vector<16x32xf32>
    %c0_14 = arith.constant 0 : index
    %c0_15 = arith.constant 0 : index
    %16 = vector.load %arg7[%c0_14, %c0_15] : memref<1x32xf32, #tpu.memory_space<vmem>>, vector<1x32xf32>
    %17 = vector.broadcast %16 : vector<1x32xf32> to vector<16x32xf32>
    %18 = arith.addf %15, %17 : vector<16x32xf32>
    %19 = vector.shape_cast %18 : vector<16x32xf32> to vector<2x8x32xf32>
    %cst_16 = arith.constant dense<0.000000e+00> : vector<2x8x8xf32>
    %20 = tpu.matmul %7, %13, %cst_16 {dimension_numbers = #tpu.dot_dimension_numbers<[2], [2], [1], [1], [0, 0, 0, 1, 1, 1], [0], [0]>} : vector<2x8x32xf32>, vector<2x8x32xf32>, vector<2x8x8xf32> -> vector<2x8x8xf32>
    %cst_17 = arith.constant 0.176776692 : f32
    %21 = vector.broadcast %cst_17 : f32 to vector<2x8x8xf32>
    %22 = arith.mulf %20, %21 : vector<2x8x8xf32>
    %cst_18 = arith.constant dense<0xFF800000> : vector<2x8xf32>
    %23 = vector.multi_reduction <maximumf>, %22, %cst_18 [2] : vector<2x8x8xf32> to vector<2x8xf32>
    %24 = vector.shape_cast %23 : vector<2x8xf32> to vector<2x8x1xf32>
    %25 = vector.broadcast %24 : vector<2x8x1xf32> to vector<2x8x8xf32>
    %26 = arith.subf %22, %25 : vector<2x8x8xf32>
    %27 = math.exp %26 : vector<2x8x8xf32>
    %cst_19 = arith.constant dense<0.000000e+00> : vector<2x8xf32>
    %28 = vector.multi_reduction <add>, %27, %cst_19 [2] : vector<2x8x8xf32> to vector<2x8xf32>
    %29 = vector.shape_cast %28 : vector<2x8xf32> to vector<2x8x1xf32>
    %30 = tpu.reciprocal %29 : vector<2x8x1xf32> -> vector<2x8x1xf32>
    %31 = vector.broadcast %30 : vector<2x8x1xf32> to vector<2x8x8xf32>
    %32 = arith.mulf %27, %31 : vector<2x8x8xf32>
    %cst_20 = arith.constant dense<0.000000e+00> : vector<2x8x32xf32>
    %33 = tpu.matmul %32, %19, %cst_20 {dimension_numbers = #tpu.dot_dimension_numbers<[2], [1], [1], [2], [0, 0, 0, 1, 1, 2], [0], [0]>} : vector<2x8x8xf32>, vector<2x8x32xf32>, vector<2x8x32xf32> -> vector<2x8x32xf32>
    %c0_21 = arith.constant 0 : index
    %c0_22 = arith.constant 0 : index
    %c0_23 = arith.constant 0 : index
    %34 = vector.load %arg8[%c0_21, %c0_22, %c0_23] : memref<2x8x32xf32, #tpu.memory_space<vmem>>, vector<2x8x32xf32>
    tpu.vector_store %arg8[%c0_21, %c0_22, %c0_23], %33 {strides = array<i32>} : memref<2x8x32xf32, #tpu.memory_space<vmem>>, vector<2x8x32xf32>,
    return
  }
  func.func @transform_0(%arg0: i32) -> (i32, i32, i32) {
    %c0_i32 = arith.constant 0 : i32
    %c0_i32_0 = arith.constant 0 : i32
    %c0_i32_1 = arith.constant 0 : i32
    %c0_i32_2 = arith.constant 0 : i32
    return %c0_i32, %c0_i32_0, %c0_i32_1 : i32, i32, i32
  }
  func.func @transform_1(%arg0: i32) -> (i32, i32) {
    %c0_i32 = arith.constant 0 : i32
    %c0_i32_0 = arith.constant 0 : i32
    %c0_i32_1 = arith.constant 0 : i32
    return %c0_i32, %c0_i32_0 : i32, i32
  }
  func.func @transform_2(%arg0: i32) -> (i32, i32) {
    %c0_i32 = arith.constant 0 : i32
    %c0_i32_0 = arith.constant 0 : i32
    %c0_i32_1 = arith.constant 0 : i32
    return %c0_i32, %c0_i32_0 : i32, i32
  }
  func.func @transform_3(%arg0: i32) -> (i32, i32) {
    %c0_i32 = arith.constant 0 : i32
    %c0_i32_0 = arith.constant 0 : i32
    %c0_i32_1 = arith.constant 0 : i32
    return %c0_i32, %c0_i32_0 : i32, i32
  }
  func.func @transform_4(%arg0: i32) -> (i32, i32) {
    %c0_i32 = arith.constant 0 : i32
    %c0_i32_0 = arith.constant 0 : i32
    %c0_i32_1 = arith.constant 0 : i32
    return %c0_i32, %c0_i32_0 : i32, i32
  }
  func.func @transform_5(%arg0: i32) -> (i32, i32) {
    %c0_i32 = arith.constant 0 : i32
    %c0_i32_0 = arith.constant 0 : i32
    %c0_i32_1 = arith.constant 0 : i32
    return %c0_i32, %c0_i32_0 : i32, i32
  }
  func.func @transform_6(%arg0: i32) -> (i32, i32) {
    %c0_i32 = arith.constant 0 : i32
    %c0_i32_0 = arith.constant 0 : i32
    %c0_i32_1 = arith.constant 0 : i32
    return %c0_i32, %c0_i32_0 : i32, i32
  }
  func.func @transform_7(%arg0: i32) -> (i32, i32, i32) {
    %c0_i32 = arith.constant 0 : i32
    %c0_i32_0 = arith.constant 0 : i32
    %c0_i32_1 = arith.constant 0 : i32
    %c0_i32_2 = arith.constant 0 : i32
    return %c0_i32, %c0_i32_0, %c0_i32_1 : i32, i32, i32
  }
}

</mosaic_0001>

<bundles_post_ra>
// kernel: tpu_custom_call.1
= control target key start
LH: loop header
LB: loop body
LE: loop exit
PB: predicated region body
PF: predicated region fallthrough
CT: control target
= control target key end

     0   :  { %12 = vsyncpa [#allocation3], 0  ;;  %s1022_s0 = inlined_call_operand.hbm [shape: f32[2,8,32], index: 0, kind: input, shape index: {}]   ;;  %s1023_s1 = inlined_call_operand.hbm [shape: f32[32,32], index: 1, kind: input, shape index: {}]   ;;  %s1024_s2 = inlined_call_operand.vmem [shape: f32[1,32], index: 2, kind: input, shape index: {}]   ;;  %s1025_s3 = inlined_call_operand.hbm [shape: f32[32,32], index: 3, kind: input, shape index: {}]   ;;  %s1026_s4 = inlined_call_operand.vmem [shape: f32[1,32], index: 4, kind: input, shape index: {}]   ;;  %s1027_s5 = inlined_call_operand.hbm [shape: f32[32,32], index: 5, kind: input, shape index: {}]   ;;  %s1028_s6 = inlined_call_operand.vmem [shape: f32[1,32], index: 6, kind: input, shape index: {}]   ;;  %s1029_s7 = inlined_call_operand.hbm [shape: f32[2,8,32], index: 7, kind: output, shape index: {}]  }
   0x1   :  { %13 = vsyncpa [#allocation6], 0 }
   0x2   :  { %14 = vsyncpa [#allocation9], 0 }
   0x3   :  { %15 = vsyncpa [#allocation4], 0  ;;  %s912_s24 = smov [#allocation5]   ;;  %s913_s26 = smov [#allocation2]  }
   0x4   :  { %s33_s25 = sshll.u32 %s912_s24, 4  ;;  %s21_s27 = sshll.u32 %s913_s26, 4  ;;  %s34_s25 = int_to_ptr.vmem [resolvable:$true] %s33_s25  ;;  %s22_s27 = int_to_ptr.vmem [resolvable:$true] %s21_s27 }
   0x5   :  { %s812_s28 = scalar_lea.vmem %s34_s25, 512  ;;  %p817_p1 = scmp.lt.s32.totalorder %s34_s25, %s34_s25 }
   0x6   :  { %p813_p0 = scmp.ne.s32.totalorder %s34_s25, %s812_s28  ;;  %p818_p2 = scmp.lt.s32.totalorder %s812_s28, %s812_s28 }
   0x8   :  { %p819_p3 = por %p818_p2, %p817_p1 }
   0xa   :  { %p820_p4 = pnand %p819_p3, %p813_p0 }
   0xc   :  { %823 = shalt.err (!%p820_p4)
}
   0xd   :  { %s914_s29 = smov 128   ;;  %s915_s30 = smov 8  }
   0xe   :  { %39 = dma.hbm_to_vmem [thread:$0]  %s1023_s1, 512, %s34_s25, [#allocation6], %s914_s29, %s914_s29, %s915_s30  }
   0xf   :  { %s832_s10 = scalar_lea.vmem %s22_s27, 256  ;;  %p837_p6 = scmp.lt.s32.totalorder %s22_s27, %s22_s27 }
  0x10   :  { %p833_p5 = scmp.ne.s32.totalorder %s22_s27, %s832_s10  ;;  %p838_p7 = scmp.lt.s32.totalorder %s832_s10, %s832_s10 }
  0x12   :  { %p839_p8 = por %p838_p7, %p837_p6 }
  0x14   :  { %p840_p9 = pnand %p839_p8, %p833_p5 }
  0x16   :  { %843 = shalt.err (!%p840_p9)
}
  0x17   :  { %27 = dma.hbm_to_vmem [thread:$0]  %s1022_s0, 256, %s22_s27, [#allocation3], %s914_s29, %s914_s29, %s915_s30  }
  0x18   :  { %s916_s13 = smov [#allocation7]   ;;  %s917_s15 = smov [#allocation8]  }
  0x19   :  { %s47_s14 = sshll.u32 %s916_s13, 4  ;;  %s61_s16 = sshll.u32 %s917_s15, 4  ;;  %s48_s14 = int_to_ptr.vmem [resolvable:$true] %s47_s14  ;;  %s62_s16 = int_to_ptr.vmem [resolvable:$true] %s61_s16 }
  0x1a   :  { %s852_s1 = scalar_lea.vmem %s48_s14, 512  ;;  %p857_p11 = scmp.lt.s32.totalorder %s48_s14, %s48_s14 }
  0x1b   :  { %p853_p10 = scmp.ne.s32.totalorder %s48_s14, %s852_s1  ;;  %p858_p12 = scmp.lt.s32.totalorder %s852_s1, %s852_s1 }
  0x1d   :  { %p859_p13 = por %p858_p12, %p857_p11 }
  0x1f   :  { %p860_p0 = pnand %p859_p13, %p853_p10 }
  0x21   :  { %863 = shalt.err (!%p860_p0)
}
  0x22   :  { %53 = dma.hbm_to_vmem [thread:$0]  %s1025_s3, 512, %s48_s14, [#allocation6], %s914_s29, %s914_s29, %s915_s30  }
  0x23   :  { %s872_s0 = scalar_lea.vmem %s62_s16, 512  ;;  %p877_p2 = scmp.lt.s32.totalorder %s62_s16, %s62_s16 }
  0x24   :  { %p873_p1 = scmp.ne.s32.totalorder %s62_s16, %s872_s0  ;;  %p878_p3 = scmp.lt.s32.totalorder %s872_s0, %s872_s0 }
  0x26   :  { %p879_p4 = por %p878_p3, %p877_p2 }
  0x28   :  { %p880_p5 = pnand %p879_p4, %p873_p1 }
  0x2a   :  { %883 = shalt.err (!%p880_p5)
}
  0x2b   :  { %67 = dma.hbm_to_vmem [thread:$0]  %s1027_s5, 512, %s62_s16, [#allocation9], %s914_s29, %s914_s29, %s915_s30  }
  0x2c   :  { %904 = dma.done.wait [#allocation3], 256  }
  0x2d   :  { %905 = vsyncadd [#allocation3], 4294967040 }
  0x2e   :  { %906 = dma.done.wait [#allocation6], 1024  }
  0x2f   :  { %907 = vsyncadd [#allocation6], 4294966272 }
  0x30   :  { %908 = dma.done.wait [#allocation9], 512  }
  0x31   :  { %909 = vsyncadd [#allocation9], 4294966784  ;;  %v180_v0 = vld [vmem:[#allocation7 + $0x18] sm:$0xff]  ;;  %v179_v2 = vld [vmem:[#allocation7 + $0x10] sm:$0xff]  ;;  %vm95_vm0 = vcmask 261120   ;;  %v918_v10 = vmov 0.0  }
  0x32   :  { %v87_v1 = vld [vmem:[#allocation5 + $0x18] sm:$0xff]  ;;  %745 = vmatprep.subr.mxu1 %v180_v0  ;;  %v86_v3 = vld [vmem:[#allocation5 + $0x10] sm:$0xff]  ;;  %v178_v4 = vld [vmem:[#allocation7 + $0x8] sm:$0xff]  ;;  %vm919_vm1 = vmmov 0   ;;  %vm503_vm2 = vcmask 64512   ;;  %s920_s23 = smov [#allocation10]  }
  0x33   :  { %734 = vmatprep.subr.mxu0 %v87_v1  ;;  %746 = vmatpush3.msra.mxu1 %v180_v0  ;;  %v85_v5 = vld [vmem:[#allocation5 + $0x8] sm:$0xff]  ;;  %v177_v6 = vld [vmem:[#allocation7] sm:$0xff]  ;;  %v82_v7 = vld [vmem:[#allocation2] sm:$0xff] }
  0x34   :  { %735 = vmatpush3.msra.mxu0 %v87_v1  ;;  %747 = vmatprep.subr.mxu1 %v179_v2  ;;  %v84_v8 = vld [vmem:[#allocation5] sm:$0xff]  ;;  %v83_v9 = vld [vmem:[#allocation2 + $0x8] sm:$0xff]  ;;  %v696_v12 = vld [vmem:[%s1026_s4] ss:$0 sm:$0xff] }
  0x35   :  { %736 = vmatprep.subr.mxu0 %v86_v3  ;;  %748 = vmatpush3.msra.mxu1 %v179_v2  ;;  %v693_v15 = vld [vmem:[%s1024_s2] ss:$0 sm:$0xff]  ;;  %v266_v21 = vld [vmem:[#allocation8 + $0x18] sm:$0xff]  ;;  %v264_v23 = vld [vmem:[#allocation8 + $0x8] sm:$0xff] }
  0x36   :  { %737 = vmatpush3.msra.mxu0 %v86_v3  ;;  %749 = vmatprep.subr.mxu1 %v178_v4  ;;  %v265_v22 = vld [vmem:[#allocation8 + $0x10] sm:$0xff]  ;;  %v263_v24 = vld [vmem:[#allocation8] sm:$0xff] }
  0x37   :  { %738 = vmatprep.subr.mxu0 %v85_v5  ;;  %750 = vmatpush3.msra.mxu1 %v178_v4  ;;  %v699_v44 = vld [vmem:[%s1028_s6] ss:$0 sm:$0xff]  ;;  %s679_s6 = sshll.u32 %s920_s23, 4  ;;  %s680_s6 = int_to_ptr.vmem [resolvable:$true] %s679_s6 }
  0x38   :  { %739 = vmatpush3.msra.mxu0 %v85_v5  ;;  %751 = vmatprep.subr.mxu1 %v177_v6  ;;  %s884_s24 = scalar_lea.vmem %s680_s6, 256  ;;  %p889_p7 = scmp.lt.s32.totalorder %s680_s6, %s680_s6 }
  0x39   :  { %753 = vmatprep.mubr.msk.f32.mxu1 %vm95_vm0, %v82_v7  ;;  %752 = vmatpush3.msra.mxu1 %v177_v6  ;;  %p885_p6 = scmp.ne.s32.totalorder %s680_s6, %s884_s24  ;;  %p890_p8 = scmp.lt.s32.totalorder %s884_s24, %s884_s24 }
  0x3a   :  { %740 = vmatprep.subr.mxu0 %v84_v8  ;;  %754 = vmatmul.mubr.msk.f32.vlgmr.msra.gmra.mxu1 %vm95_vm0, %v83_v9 }
  0x3b   :  { %741 = vmatpush3.msra.mxu0 %v84_v8  ;;  %742 = vmatprep.mubr.msk.f32.mxu0 %vm95_vm0, %v82_v7  ;;  %p891_p9 = por %p890_p8, %p889_p7 }
  0x3c   :  { %743 = vmatmul.mubr.msk.f32.vlgmr.msra.gmra.mxu0 %vm95_vm0, %v83_v9  ;;  %767 = vmatprep.subr.mxu1 %v918_v10 }
  0x3d   :  { %764 = vmatprep.mubr.msk.f32.mxu0 %vm95_vm0, %v82_v7  ;;  %769 = vmatprep.mubr.msk.f32.mxu1 %vm919_vm1, %v918_v10  ;;  %p892_p10 = pnand %p891_p9, %p885_p6 }
  0x3e   :  { %756 = vmatprep.subr.mxu0 %v266_v21 }
  0x3f   :  { %757 = vmatpush3.msra.mxu0 %v266_v21 }
  0x40   :  { %758 = vmatprep.subr.mxu0 %v265_v22 }
  0x41   :  { %759 = vmatpush3.msra.mxu0 %v265_v22 }
  0x42   :  { %760 = vmatprep.subr.mxu0 %v264_v23 }
  0x43   :  { %761 = vmatpush3.msra.mxu0 %v264_v23 }
  0x44   :  { %762 = vmatprep.subr.mxu0 %v263_v24 }
  0x45   :  { %763 = vmatpush3.msra.mxu0 %v263_v24 }
  0x46   :  { %765 = vmatmul.mubr.msk.f32.vlgmr.msra.gmra.mxu0 %vm95_vm0, %v83_v9  ;;  %777 = vmatprep.subr.mxu0 %v918_v10 }
  0x47   :  { %779 = vmatprep.mubr.msk.f32.mxu0 %vm919_vm1, %v918_v10 }
  0xfa   :  { %v755_v11 = vpop.f32.mrf.mxu1 }
  0xfb   :  { %v260_v19 = vadd.f32 %v755_v11, %v696_v12 }
  0xfc   :  { %v744_v13 = vpop.f32.mrf.mxu0  ;;  %v254_v14 = vpop.f32.mrf.mxu1 }
  0xfd   :  { %v255_v16 = vadd.f32 %v696_v12, %v254_v14  ;;  %v174_v20 = vadd.f32 %v744_v13, %v693_v15 }
  0xfe   :  { %v168_v17 = vpop.f32.mrf.mxu0 }
  0xff   :  { %768 = vmatpush3.xpose.msk.msra.mxu1 %vm95_vm0, %v255_v16  ;;  %v169_v18 = vadd.f32 %v693_v15, %v168_v17 }
 0x100   :  { %772 = vmatprep.subr.mxu1 %v918_v10 }
 0x102   :  { %770 = vmatmul.mubr.msk.f32.vlgmr.msra.gmra.mxu1 %vm95_vm0, %v169_v18 }
 0x103   :  { %773 = vmatpush3.xpose.msk.msra.mxu1 %vm95_vm0, %v260_v19  ;;  %774 = vmatprep.mubr.msk.f32.mxu1 %vm919_vm1, %v918_v10 }
 0x104   :  { %782 = vmatprep.subr.mxu1 %v918_v10 }
 0x106   :  { %775 = vmatmul.mubr.msk.f32.vlgmr.msra.gmra.mxu1 %vm95_vm0, %v174_v20  ;;  %v766_v43 = vpop.f32.mrf.mxu0 }
 0x107   :  { %784 = vmatprep.mubr.msk.f32.mxu1 %vm919_vm1, %v918_v10  ;;  %v346_v45 = vadd.f32 %v766_v43, %v699_v44 }
 0x108   :  { %v340_v46 = vpop.f32.mrf.mxu0 }
 0x109   :  { %v341_v47 = vadd.f32 %v699_v44, %v340_v46  ;;  %783 = vmatpush3.msra.mxu1 %v346_v45 }
 0x10b   :  { %778 = vmatpush3.msra.mxu0 %v341_v47 }
 0x1c2   :  { %v421_v25 = vpop.f32.mrf.mxu1 }
 0x1c3   :  { %v501_v26 = vmul.f32 0.17677669, %v421_v25 }
 0x1c4   :  { %v771_v27 = vpop.f32.mrf.mxu1 }
 0x1c5   :  { %v504_v28 = vsel %vm503_vm2, %v501_v26, -inf }
 0x1c6   :  { %505 = vmax.xlane.f32.xlu0 %v504_v28  ;;  %v497_v29 = vpop.f32.mrf.mxu1 }
 0x1c7   :  { %v502_v30 = vmul.f32 0.17677669, %v497_v29 }
 0x1c8   :  { %v776_v31 = vpop.f32.mrf.mxu1 }
 0x1c9   :  { %v507_v32 = vsel %vm503_vm2, %v502_v30, -inf }
 0x1ca   :  { %508 = vmax.xlane.f32.xlu0 %v507_v32 }
 0x24f   :  { %v506_v33 = vpop.xlane.xlu0 %505 }
 0x250   :  { %v510_v34 = vsub.f32 %v501_v26, %v506_v33 }
 0x252   :  { %v512_v35 = vmul.f32 1.442695, %v510_v34 }
 0x253   :  { %v509_v36 = vpop.xlane.xlu0 %508 }
 0x254   :  { %796 = vpow2.f32 %v512_v35  ;;  %v511_v37 = vsub.f32 %v502_v30, %v509_v36 }
 0x256   :  { %v514_v38 = vmul.f32 1.442695, %v511_v37 }
 0x258   :  { %798 = vpow2.f32 %v514_v38 }
 0x261   :  { %v797_v39 = vpop.eup %796 }
 0x262   :  { %v516_v40 = vsel %vm503_vm2, %v797_v39, 0.0 }
 0x263   :  { %517 = vadd.xlane.f32.xlu1 %v516_v40 }
 0x265   :  { %v799_v41 = vpop.eup %798 }
 0x266   :  { %v519_v42 = vsel %vm503_vm2, %v799_v41, 0.0 }
 0x267   :  { %520 = vadd.xlane.f32.xlu1 %v519_v42 }
 0x2ec   :  { %v518_v48 = vpop.xlane.xlu1 %517 }
 0x2ed   :  { %800 = vrcp.f32 %v518_v48 }
 0x2f0   :  { %v521_v49 = vpop.xlane.xlu1 %520 }
 0x2f1   :  { %802 = vrcp.f32 %v521_v49 }
 0x2fa   :  { %v801_v50 = vpop.eup %800 }
 0x2fb   :  { %v524_v51 = vmul.f32 %v801_v50, %v797_v39 }
 0x2fd   :  { %780 = vmatmul.mubr.msk.f32.vlgmr.msra.gmra.mxu0 %vm503_vm2, %v524_v51 }
 0x2fe   :  { %v803_v52 = vpop.eup %802 }
 0x2ff   :  { %v525_v53 = vmul.f32 %v803_v52, %v799_v41 }
 0x301   :  { %785 = vmatmul.mubr.msk.f32.vlgmr.msra.gmra.mxu1 %vm503_vm2, %v525_v53 }
 0x3bd   :  { %v595_v54 = vpop.f32.mrf.mxu0 }
 0x3be   :  { %672 = vst.msk [vmem:[#allocation10] sm:$0xff] %vm95_vm0, %v595_v54 }
 0x3bf   :  { %v781_v55 = vpop.f32.mrf.mxu0 }
 0x3c1   :  { %v668_v56 = vpop.f32.mrf.mxu1 }
 0x3c2   :  { %673 = vst.msk [vmem:[#allocation10 + $0x8] sm:$0xff] %vm95_vm0, %v668_v56 }
 0x3c3   :  { %v786_v57 = vpop.f32.mrf.mxu1 }
 0x3c4   :  { %895 = shalt.err (!%p892_p10)
}
 0x3c5   :  { %685 = dma.vmem_to_hbm [thread:$0]  %s680_s6, 256, %s1029_s7, [#allocation4], %s914_s29, %s914_s29, %s915_s30  }
 0x3c6   :  { %910 = dma.done.wait [#allocation4], 256  }
 0x3c7   :  { %911 = vsyncadd [#allocation4], 4294967040 }
 0x3c8   :  { %689 = vsyncpa [#allocation3], 1 }
 0x3c9   :  { %690 = vsyncpa [#allocation6], 1 }
 0x3ca   :  { %691 = vsyncpa [#allocation9], 1 }
 0x3cb   :  { %692 = vsyncpa [#allocation4], 1 }

</bundles_post_ra>
